<compile_context>
chip_gen: v5e
topology: v5e:2x2
jax: 0.10.0
libtpu: 0.0.40
codegen_flags: <defaults>
</compile_context>

<pallas_src>
import math

import jax
import jax.numpy as jnp
from jax import lax
from jax.experimental import pallas as pl
from jax.experimental.pallas import tpu as pltpu

_CONTRACT_LAST = (((1,), (1,)), ((), ()))  # contract the last dim of both operands


# --------------------------------------------------------------------------
# Pallas kernels  --  grid = (M/tm, O/tn, I/tk); K (axis 2) is the reduction
# --------------------------------------------------------------------------
def _base_linear_kernel(x_ref, w_ref, bias_ref, o_ref, acc_ref):
    """y = x @ W.T + bias (used for init=True / base-only path)."""
    k = pl.program_id(2)

    @pl.when(k == 0)
    def _():
        acc_ref[...] = jnp.broadcast_to(bias_ref[...], acc_ref.shape)

    acc_ref[...] += lax.dot_general(
        x_ref[...], w_ref[...], _CONTRACT_LAST, preferred_element_type=jnp.float32)

    @pl.when(k == pl.num_programs(2) - 1)
    def _():
        o_ref[...] = acc_ref[...].astype(o_ref.dtype)


def _lora_linear_kernel(x_ref, w_ref, bias_ref, xa_ref, b_ref, o_ref, acc_ref):
    """y = x @ W.T + xa @ B_cat.T + bias, with xa = x @ A_s.T precomputed."""
    k = pl.program_id(2)

    @pl.when(k == 0)
    def _():
        acc_ref[...] = jnp.broadcast_to(bias_ref[...], acc_ref.shape)

    # Only the base matmul runs per K step (single accumulator RMW per step).
    acc_ref[...] += lax.dot_general(
        x_ref[...], w_ref[...], _CONTRACT_LAST, preferred_element_type=jnp.float32)

    @pl.when(k == pl.num_programs(2) - 1)
    def _():
        # Single low-rank correction per (i, j) tile: (tm, R) . (tn, R)^T.
        acc_ref[...] += lax.dot_general(
            xa_ref[...], b_ref[...], _CONTRACT_LAST,
            preferred_element_type=jnp.float32)
        o_ref[...] = acc_ref[...].astype(o_ref.dtype)


# --------------------------------------------------------------------------
# Host-side helpers
# --------------------------------------------------------------------------
def _round_up(v, m):
    return ((v + m - 1) // m) * m


def _pick_tile(dim, target):
    """(tile, padded_dim): full-extent block if dim fits one target-sized tile
    (allowed even if unaligned), otherwise an aligned `target` tile with the
    dim padded up to a multiple of it."""
    if dim <= target:
        return dim, dim
    return target, _round_up(dim, target)


def _pad2d(a, rows, cols):
    pr, pc = rows - a.shape[0], cols - a.shape[1]
    if pr == 0 and pc == 0:
        return a
    return jnp.pad(a, ((0, pr), (0, pc)))


def fused_lora_linear(x2d, w_prepared, bias, xa=None, b_cat_prepared=None, *,
                      tn, tk, tm=512, compute_dtype=jnp.bfloat16,
                      out_dtype=jnp.float32):
    """y = x2d @ W.T + (xa @ B_cat.T if xa is given) + bias.

    `w_prepared` / `b_cat_prepared` are already cast to compute_dtype and
    padded over the O / I axes (cached on the module)."""
    M, _ = x2d.shape
    Op, Ip = w_prepared.shape
    O = bias.shape[0]
    apply_lora = xa is not None

    tm, Mp = _pick_tile(M, tm)

    # v7x megacore: if M fits in a single tile, keep >= 2 blocks on the O axis
    # so both TensorCores get parallel work (no-op on v5e/v6e).
    if Mp // tm == 1 and Op // tn == 1 and Op >= 256 and Op % 256 == 0:
        tn = Op // 2

    xp = _pad2d(x2d.astype(compute_dtype), Mp, Ip)
    biasp = _pad2d(bias.reshape(1, O).astype(jnp.float32), 1, Op)

    grid = (Mp // tm, Op // tn, Ip // tk)

    in_specs = [
        pl.BlockSpec((tm, tk), lambda i, j, k: (i, k)),   # x       (M, I)
        pl.BlockSpec((tn, tk), lambda i, j, k: (j, k)),   # W       (O, I)
        pl.BlockSpec((1, tn), lambda i, j, k: (0, j)),    # bias    (1, O)
    ]
    operands = [xp, w_prepared, biasp]

    R = 0
    if apply_lora:
        R = xa.shape[1]
        xap = _pad2d(xa.astype(compute_dtype), Mp, R)     # single bf16 cast of xa
        in_specs += [
            pl.BlockSpec((tm, R), lambda i, j, k: (i, 0)),   # xa     (M, N*r)
            pl.BlockSpec((tn, R), lambda i, j, k: (j, 0)),   # B_cat  (O, N*r)
        ]
        operands += [xap, b_cat_prepared]
        kernel = _lora_linear_kernel
    else:
        kernel = _base_linear_kernel

    # --- VMEM budget: generation-aware cap, never below the requirement -----
    in_item = jnp.dtype(compute_dtype).itemsize
    out_item = jnp.dtype(out_dtype).itemsize
    est = (2 * in_item * (tm * tk + tn * tk + tm * R + tn * R)  # dbl-buffered inputs
           + 2 * tn * 4                                         # bias blocks (f32)
           + 2 * tm * tn * out_item                             # dbl-buffered output
           + tm * tn * 4)                                       # f32 accumulator
    try:
        vmem_cap = getattr(pltpu.get_tpu_info(), "vmem_capacity_bytes", None) \
            or (64 << 20)
    except Exception:
        vmem_cap = 64 << 20                                     # conservative fallback
    soft_cap = int(min(0.85 * vmem_cap, 100 * 1024 * 1024))     # ~54 MiB v7x, 100 MiB v5e/v6e
    vmem_limit = int(max(min(max(2 * est, 32 * 1024 * 1024), soft_cap),
                         est + (2 << 20)))

    out = pl.pallas_call(
        kernel,
        out_shape=jax.ShapeDtypeStruct((Mp, Op), out_dtype),
        grid_spec=pltpu.PrefetchScalarGridSpec(
            num_scalar_prefetch=0,
            grid=grid,
            in_specs=in_specs,
            out_specs=pl.BlockSpec((tm, tn), lambda i, j, k: (i, j)),
            scratch_shapes=[pltpu.VMEM((tm, tn), jnp.float32)],
        ),
        compiler_params=pltpu.CompilerParams(
            dimension_semantics=("parallel", "parallel", "arbitrary"),
            vmem_limit_bytes=vmem_limit,
        ),
    )(*operands)

    return out[:M, :O]


# --------------------------------------------------------------------------
# Module wrapper (mirrors the PyTorch LoraLinear init + forward)
# --------------------------------------------------------------------------
class LoraLinearPallas:
    def __init__(self, key, in_features, out_features, num_group, num_loras, r,
                 init_type="kaiming", std_scale=0.001, apply_bias=False,
                 compute_dtype=jnp.bfloat16, out_dtype=jnp.float32,
                 tn_target=512, tk_target=1024):
        self.in_features = in_features
        self.out_features = out_features
        self.num_loras = num_loras
        self.r = r
        self.apply_bias = apply_bias
        self.compute_dtype = compute_dtype
        self.out_dtype = out_dtype

        keys = jax.random.split(key, 4 + num_group)

        # base nn.Linear init: U(-1/sqrt(in), 1/sqrt(in)) for weight and bias.
        bound = 1.0 / math.sqrt(in_features)
        self.base_weight = jax.random.uniform(
            keys[0], (out_features, in_features), jnp.float32, -bound, bound)
        self.base_bias = jax.random.uniform(
            keys[1], (out_features,), jnp.float32, -bound, bound)

        # lora_score: ParameterList of num_group tensors, each randn(num_loras)
        self.lora_score = [
            jax.random.normal(keys[4 + g], (num_loras,), jnp.float32)
            for g in range(num_group)
        ]

        # lora_A: kaiming_uniform_(a=sqrt(5)) -> U(-1/sqrt(fan_in), 1/sqrt(fan_in))
        if init_type == "kaiming":
            fan_in = r * in_features
            a_bound = 1.0 / math.sqrt(fan_in)
            self.lora_A = jax.random.uniform(
                keys[2], (num_loras, r, in_features), jnp.float32, -a_bound, a_bound)
        else:  # 'normal'
            self.lora_A = std_scale * jax.random.normal(
                keys[2], (num_loras, r, in_features), jnp.float32)

        # lora_B: zeros
        self.lora_B = jnp.zeros((num_loras, out_features, r), jnp.float32)

        if apply_bias:
            self.lora_bias = jnp.zeros((num_loras, out_features), jnp.float32)

        # (O, I) tiling is fixed per module -> cache the cast+padded base weight
        # and the lane-dense padded B_cat so per-call glue is only the tiny
        # score*A fold + the (M, N*r) xa matmul.
        self._tn, self._Op = _pick_tile(out_features, tn_target)
        self._tk, self._Ip = _pick_tile(in_features, tk_target)
        self._w_prepared = _pad2d(self.base_weight.astype(compute_dtype),
                                  self._Op, self._Ip)
        self._refresh_b_cat()

    # -- cached-parameter maintenance -------------------------------------
    def _refresh_b_cat(self):
        O, N, r = self.out_features, self.num_loras, self.r
        b_cat = jnp.transpose(self.lora_B, (1, 0, 2)).reshape(O, N * r)  # lane-dense
        self._b_cat_prepared = _pad2d(b_cat.astype(self.compute_dtype),
                                      self._Op, N * r)

    def set_lora_B(self, new_B):
        self.lora_B = jnp.asarray(new_B, jnp.float32)
        self._refresh_b_cat()

    # -- forward ------------------------------------------------------------
    def __call__(self, x, *, init=False, tuner_index=0):
        lead = x.shape[:-1]
        N, O, I, r = self.num_loras, self.out_features, self.in_features, self.r
        x2d = x.reshape(-1, I)

        if init:
            # Base-only kernel: the LoRA branch is skipped entirely.
            y2d = fused_lora_linear(
                x2d, self._w_prepared, self.base_bias,
                tn=self._tn, tk=self._tk,
                compute_dtype=self.compute_dtype, out_dtype=self.out_dtype)
        else:
            # Tiny host-side glue: softmax over N scores, score folded into A,
            # then xa = x @ A_s.T precomputed in f32 (M x N*r is tiny) so the
            # kernel only does one low-rank correction per output tile.
            score = jax.nn.softmax(self.lora_score[tuner_index])            # (N,)
            a_scaled = (score[:, None, None] * self.lora_A).reshape(N * r, I)
            xa = x2d @ a_scaled.T                                           # (M, N*r) f32
            bias = self.base_bias
            if self.apply_bias:
                bias = bias + jnp.einsum("n,no->o", score, self.lora_bias)
            y2d = fused_lora_linear(
                x2d, self._w_prepared, bias, xa, self._b_cat_prepared,
                tn=self._tn, tk=self._tk,
                compute_dtype=self.compute_dtype, out_dtype=self.out_dtype)

        return y2d.reshape(*lead, O)


# --------------------------------------------------------------------------
# Demo / correctness check
# --------------------------------------------------------------------------
if __name__ == "__main__":
    key = jax.random.PRNGKey(0)
    k_mod, k_mod2, k_x, k_b, k_lb = jax.random.split(key, 5)

    batch, seq = 2, 8
    in_features, out_features = 32, 16
    num_group, num_loras, r = 2, 4, 8

    mod = LoraLinearPallas(k_mod, in_features, out_features,
                           num_group, num_loras, r,
                           init_type="kaiming", apply_bias=False)

    # Simulate trained adapters so the LoRA path is actually exercised
    # (lora_B initializes to zeros per the module spec, which would make the
    #  LoRA contribution trivially zero).
    mod.set_lora_B(0.1 * jax.random.normal(
        k_b, (num_loras, out_features, r), jnp.float32))

    x = jax.random.normal(k_x, (batch, seq, in_features), jnp.float32)

    # --- fused kernel forward ---
    y = mod(x, tuner_index=0)
    jax.block_until_ready(y)

    # --- pure-JAX f32 reference of the same forward semantics ---
    score = jax.nn.softmax(mod.lora_score[0])
    wd = jnp.einsum("n,nor,nri->oi", score, mod.lora_B, mod.lora_A)
    adj_w = mod.base_weight + wd
    y_ref = (x.reshape(-1, in_features) @ adj_w.T + mod.base_bias)
    y_ref = y_ref.reshape(batch, seq, out_features)

    assert y.shape == (batch, seq, out_features)
    # bf16 MXU inputs with f32 accumulation -> loose-ish tolerance vs f32 ref.
    assert jnp.allclose(y, y_ref, atol=5e-2, rtol=5e-2), "mismatch vs reference"

    # --- init=True path (base layer only; LoRA branch skipped entirely) ---
    y0 = mod(x, init=True)
    jax.block_until_ready(y0)
    y0_ref = (x.reshape(-1, in_features) @ mod.base_weight.T + mod.base_bias
              ).reshape(batch, seq, out_features)
    assert jnp.allclose(y0, y0_ref, atol=5e-2, rtol=5e-2), "init-path mismatch"

    # --- apply_bias=True path (score @ lora_bias folded into bias) ---
    mod_b = LoraLinearPallas(k_mod2, in_features, out_features,
                             num_group, num_loras, r,
                             init_type="normal", apply_bias=True)
    mod_b.set_lora_B(0.1 * jax.random.normal(
        k_b, (num_loras, out_features, r), jnp.float32))
    mod_b.lora_bias = 0.1 * jax.random.normal(
        k_lb, (num_loras, out_features), jnp.float32)
    yb = mod_b(x, tuner_index=1)
    jax.block_until_ready(yb)
    score_b = jax.nn.softmax(mod_b.lora_score[1])
    wd_b = jnp.einsum("n,nor,nri->oi", score_b, mod_b.lora_B, mod_b.lora_A)
    bias_b = mod_b.base_bias + jnp.einsum("n,no->o", score_b, mod_b.lora_bias)
    yb_ref = (x.reshape(-1, in_features) @ (mod_b.base_weight + wd_b).T + bias_b
              ).reshape(batch, seq, out_features)
    assert jnp.allclose(yb, yb_ref, atol=5e-2, rtol=5e-2), "apply_bias mismatch"

    print("KERNEL_OK")
</pallas_src>

<mosaic_0001>
module attributes {stable_mosaic.version = 11 : i64} {
  func.func @_lora_linear_kernel(%arg0: i32, %arg1: i32, %arg2: i32, %arg3: memref<16x32xbf16, #tpu.memory_space<vmem>>, %arg4: memref<16x32xbf16, #tpu.memory_space<vmem>>, %arg5: memref<1x16xf32, #tpu.memory_space<vmem>>, %arg6: memref<16x32xbf16, #tpu.memory_space<vmem>>, %arg7: memref<16x32xbf16, #tpu.memory_space<vmem>>, %arg8: memref<16x16xf32, #tpu.memory_space<vmem>>, %arg9: memref<16x16xf32, #tpu.memory_space<vmem>>) attributes {dimension_semantics = [#tpu.dimension_semantics<parallel>, #tpu.dimension_semantics<parallel>, #tpu.dimension_semantics<arbitrary>], iteration_bounds = array<i64: 1, 1, 1>, scalar_prefetch = 0 : i64, scratch_operands = 1 : i64, tpu.core_type = #tpu.core_type<tc>, window_params = [{transform_indices = @transform_0, window_bounds = array<i64: 16, 32>}, {transform_indices = @transform_1, window_bounds = array<i64: 16, 32>}, {transform_indices = @transform_2, window_bounds = array<i64: 1, 16>}, {transform_indices = @transform_3, window_bounds = array<i64: 16, 32>}, {transform_indices = @transform_4, window_bounds = array<i64: 16, 32>}, {transform_indices = @transform_5, window_bounds = array<i64: 16, 16>}]} {
    %c0_i32 = arith.constant 0 : i32
    %0 = arith.cmpi eq, %arg2, %c0_i32 : i32
    %1 = arith.extui %0 : i1 to i32
    %c0_i32_0 = arith.constant 0 : i32
    %2 = arith.cmpi ne, %1, %c0_i32_0 : i32
    scf.if %2 {
      %c0_10 = arith.constant 0 : index
      %c0_11 = arith.constant 0 : index
      %12 = vector.load %arg5[%c0_10, %c0_11] : memref<1x16xf32, #tpu.memory_space<vmem>>, vector<1x16xf32>
      %13 = vector.shape_cast %12 : vector<1x16xf32> to vector<1x16xf32>
      %14 = vector.broadcast %13 : vector<1x16xf32> to vector<16x16xf32>
      %c0_12 = arith.constant 0 : index
      %c0_13 = arith.constant 0 : index
      %15 = vector.load %arg9[%c0_12, %c0_13] : memref<16x16xf32, #tpu.memory_space<vmem>>, vector<16x16xf32>
      tpu.vector_store %arg9[%c0_12, %c0_13], %14 {strides = array<i32>} : memref<16x16xf32, #tpu.memory_space<vmem>>, vector<16x16xf32>,
    } else {
    }
    %c0 = arith.constant 0 : index
    %c0_1 = arith.constant 0 : index
    %3 = vector.load %arg9[%c0, %c0_1] : memref<16x16xf32, #tpu.memory_space<vmem>>, vector<16x16xf32>
    %c0_2 = arith.constant 0 : index
    %c0_3 = arith.constant 0 : index
    %4 = vector.load %arg3[%c0_2, %c0_3] : memref<16x32xbf16, #tpu.memory_space<vmem>>, vector<16x32xbf16>
    %c0_4 = arith.constant 0 : index
    %c0_5 = arith.constant 0 : index
    %5 = vector.load %arg4[%c0_4, %c0_5] : memref<16x32xbf16, #tpu.memory_space<vmem>>, vector<16x32xbf16>
    %cst = arith.constant dense<0.000000e+00> : vector<16x16xf32>
    %6 = tpu.matmul %4, %5, %cst {dimension_numbers = #tpu.dot_dimension_numbers<[1], [1], [0], [0], [0, 0, 1, 0], [], []>} : vector<16x32xbf16>, vector<16x32xbf16>, vector<16x16xf32> -> vector<16x16xf32>
    %7 = arith.addf %3, %6 : vector<16x16xf32>
    %c0_6 = arith.constant 0 : index
    %c0_7 = arith.constant 0 : index
    %8 = vector.load %arg9[%c0_6, %c0_7] : memref<16x16xf32, #tpu.memory_space<vmem>>, vector<16x16xf32>
    tpu.vector_store %arg9[%c0_6, %c0_7], %7 {strides = array<i32>} : memref<16x16xf32, #tpu.memory_space<vmem>>, vector<16x16xf32>,
    %c0_i32_8 = arith.constant 0 : i32
    %9 = arith.cmpi eq, %arg2, %c0_i32_8 : i32
    %10 = arith.extui %9 : i1 to i32
    %c0_i32_9 = arith.constant 0 : i32
    %11 = arith.cmpi ne, %10, %c0_i32_9 : i32
    scf.if %11 {
      %c0_10 = arith.constant 0 : index
      %c0_11 = arith.constant 0 : index
      %12 = vector.load %arg9[%c0_10, %c0_11] : memref<16x16xf32, #tpu.memory_space<vmem>>, vector<16x16xf32>
      %c0_12 = arith.constant 0 : index
      %c0_13 = arith.constant 0 : index
      %13 = vector.load %arg6[%c0_12, %c0_13] : memref<16x32xbf16, #tpu.memory_space<vmem>>, vector<16x32xbf16>
      %c0_14 = arith.constant 0 : index
      %c0_15 = arith.constant 0 : index
      %14 = vector.load %arg7[%c0_14, %c0_15] : memref<16x32xbf16, #tpu.memory_space<vmem>>, vector<16x32xbf16>
      %cst_16 = arith.constant dense<0.000000e+00> : vector<16x16xf32>
      %15 = tpu.matmul %13, %14, %cst_16 {dimension_numbers = #tpu.dot_dimension_numbers<[1], [1], [0], [0], [0, 0, 1, 0], [], []>} : vector<16x32xbf16>, vector<16x32xbf16>, vector<16x16xf32> -> vector<16x16xf32>
      %16 = arith.addf %12, %15 : vector<16x16xf32>
      %c0_17 = arith.constant 0 : index
      %c0_18 = arith.constant 0 : index
      %17 = vector.load %arg9[%c0_17, %c0_18] : memref<16x16xf32, #tpu.memory_space<vmem>>, vector<16x16xf32>
      tpu.vector_store %arg9[%c0_17, %c0_18], %16 {strides = array<i32>} : memref<16x16xf32, #tpu.memory_space<vmem>>, vector<16x16xf32>,
      %c0_19 = arith.constant 0 : index
      %c0_20 = arith.constant 0 : index
      %18 = vector.load %arg9[%c0_19, %c0_20] : memref<16x16xf32, #tpu.memory_space<vmem>>, vector<16x16xf32>
      %c0_21 = arith.constant 0 : index
      %c0_22 = arith.constant 0 : index
      %19 = vector.load %arg8[%c0_21, %c0_22] : memref<16x16xf32, #tpu.memory_space<vmem>>, vector<16x16xf32>
      tpu.vector_store %arg8[%c0_21, %c0_22], %18 {strides = array<i32>} : memref<16x16xf32, #tpu.memory_space<vmem>>, vector<16x16xf32>,
    } else {
    }
    return
  }
  func.func @transform_0(%arg0: i32, %arg1: i32, %arg2: i32) -> (i32, i32) {
    %c0_i32 = arith.constant 0 : i32
    return %arg0, %arg2 : i32, i32
  }
  func.func @transform_1(%arg0: i32, %arg1: i32, %arg2: i32) -> (i32, i32) {
    %c0_i32 = arith.constant 0 : i32
    return %arg1, %arg2 : i32, i32
  }
  func.func @transform_2(%arg0: i32, %arg1: i32, %arg2: i32) -> (i32, i32) {
    %c0_i32 = arith.constant 0 : i32
    %c0_i32_0 = arith.constant 0 : i32
    return %c0_i32, %arg1 : i32, i32
  }
  func.func @transform_3(%arg0: i32, %arg1: i32, %arg2: i32) -> (i32, i32) {
    %c0_i32 = arith.constant 0 : i32
    %c0_i32_0 = arith.constant 0 : i32
    return %arg0, %c0_i32 : i32, i32
  }
  func.func @transform_4(%arg0: i32, %arg1: i32, %arg2: i32) -> (i32, i32) {
    %c0_i32 = arith.constant 0 : i32
    %c0_i32_0 = arith.constant 0 : i32
    return %arg1, %c0_i32 : i32, i32
  }
  func.func @transform_5(%arg0: i32, %arg1: i32, %arg2: i32) -> (i32, i32) {
    %c0_i32 = arith.constant 0 : i32
    return %arg0, %arg1 : i32, i32
  }
}

</mosaic_0001>

<bundles_post_ra>
// kernel: tpu_custom_call.1
= control target key start
LH: loop header
LB: loop body
LE: loop exit
PB: predicated region body
PF: predicated region fallthrough
CT: control target
= control target key end

     0   :  { %10 = vsyncpa [#allocation4], 0  ;;  %s431_s0 = inlined_call_operand.hbm [shape: bf16[16,32], index: 0, kind: input, shape index: {}]   ;;  %s432_s1 = inlined_call_operand.hbm [shape: bf16[16,32], index: 1, kind: input, shape index: {}]   ;;  %s433_s2 = inlined_call_operand.vmem [shape: f32[1,16], index: 2, kind: input, shape index: {}]   ;;  %s434_s3 = inlined_call_operand.hbm [shape: bf16[16,32], index: 3, kind: input, shape index: {}]   ;;  %s435_s4 = inlined_call_operand.hbm [shape: bf16[16,32], index: 4, kind: input, shape index: {}]   ;;  %s436_s5 = inlined_call_operand.hbm [shape: f32[16,16], index: 5, kind: output, shape index: {}]  }
   0x1   :  { %11 = vsyncpa [#allocation7], 0 }
   0x2   :  { %12 = vsyncpa [#allocation10], 0 }
   0x3   :  { %13 = vsyncpa [#allocation5], 0  ;;  %s31_s20 = sshll.u32 %s432_s1, 4  ;;  %s366_s21 = smov [#allocation6]   ;;  %s32_s20 = int_to_ptr.hbm [resolvable:$true] %s31_s20 }
   0x4   :  { %s33_s22 = sshll.u32 %s366_s21, 4  ;;  %s18_s25 = sshll.u32 %s431_s0, 4  ;;  %s34_s22 = int_to_ptr.vmem [resolvable:$true] %s33_s22  ;;  %s19_s25 = int_to_ptr.hbm [resolvable:$true] %s18_s25 }
   0x5   :  { %s367_s26 = smov 64   ;;  %s368_s27 = smov 4  }
   0x6   :  { %39 = dma.hbm_to_vmem [thread:$0]  %s32_s20, 128, %s34_s22, [#allocation7], %s367_s26, %s367_s26, %s368_s27  }
   0x7   :  { %s369_s28 = smov [#allocation3]   ;;  %s46_s7 = sshll.u32 %s434_s3, 4  ;;  %s47_s7 = int_to_ptr.hbm [resolvable:$true] %s46_s7 }
   0x8   :  { %s20_s29 = sshll.u32 %s369_s28, 4  ;;  %s59_s9 = sshll.u32 %s435_s4, 4  ;;  %s21_s29 = int_to_ptr.vmem [resolvable:$true] %s20_s29  ;;  %s60_s9 = int_to_ptr.hbm [resolvable:$true] %s59_s9 }
   0x9   :  { %26 = dma.hbm_to_vmem [thread:$0]  %s19_s25, 128, %s21_s29, [#allocation4], %s367_s26, %s367_s26, %s368_s27  }
   0xa   :  { %s370_s10 = smov [#allocation8]   ;;  %s371_s0 = smov [#allocation9]  }
   0xb   :  { %s48_s11 = sshll.u32 %s370_s10, 4  ;;  %s61_s12 = sshll.u32 %s371_s0, 4  ;;  %s49_s11 = int_to_ptr.vmem [resolvable:$true] %s48_s11  ;;  %s62_s12 = int_to_ptr.vmem [resolvable:$true] %s61_s12 }
   0xc   :  { %54 = dma.hbm_to_vmem [thread:$0]  %s47_s7, 128, %s49_s11, [#allocation7], %s367_s26, %s367_s26, %s368_s27  }
   0xd   :  { %67 = dma.hbm_to_vmem [thread:$0]  %s60_s9, 128, %s62_s12, [#allocation10], %s367_s26, %s367_s26, %s368_s27  }
   0xe   :  { %358 = dma.done.wait [#allocation4], 128  }
   0xf   :  { %359 = vsyncadd [#allocation4], 4294967168 }
  0x10   :  { %360 = dma.done.wait [#allocation7], 256  }
  0x11   :  { %361 = vsyncadd [#allocation7], 4294967040 }
  0x12   :  { %362 = dma.done.wait [#allocation10], 128  }
  0x13   :  { %363 = vsyncadd [#allocation10], 4294967168  ;;  %vm112_vm0 = vcmask 261120   ;;  %v225_v0 = vld [vmem:[#allocation6] sm:$0xff]  ;;  %v227_v1 = vld [vmem:[#allocation9] sm:$0xff]  ;;  %vm93_vm1 = vcmask 130048  }
  0x14   :  { %v237_v2 = vld [vmem:[%s433_s2] ss:$0 sm:$0xff]  ;;  %v117_v3 = vsel %vm112_vm0, %v225_v0, 0  ;;  %v161_v4 = vsel %vm112_vm0, %v227_v1, 0  ;;  %v224_v5 = vld [vmem:[#allocation3] sm:$0xff]  ;;  %s372_s2 = smov [#allocation11]  }
  0x15   :  { %126 = vmatpush.bf16.xpose.msra.mxu0 %v117_v3  ;;  %170 = vmatpush.bf16.xpose.msra.mxu1 %v161_v4  ;;  %94 = vst.msk [vmem:[#allocation2] sm:$0xff] %vm93_vm1, %v237_v2  ;;  %v226_v6 = vld [vmem:[#allocation8] sm:$0xff]  ;;  %s189_s13 = sshll.u32 %s372_s2, 4  ;;  %s191_s16 = sshll.u32 %s436_s5, 4  ;;  %s190_s13 = int_to_ptr.vmem [resolvable:$true] %s189_s13  ;;  %s192_s16 = int_to_ptr.hbm [resolvable:$true] %s191_s16 }
  0x16   :  { %95 = vst.msk [vmem:[#allocation2 + $0x8] sm:$0xff] %vm93_vm1, %v237_v2  ;;  %s373_s17 = smov 128   ;;  %s374_s18 = smov 8  }
  0x1c   :  { %214 = vmatmul.msk.bf16.vlgmr.msra.gmra.mxu0 %vm112_vm0, %v224_v5  ;;  %223 = vmatmul.msk.bf16.vlgmr.msra.gmra.mxu1 %vm112_vm0, %v226_v6  ;;  %v96_v7 = vld [vmem:[#allocation2] sm:$0xff] }
  0x1d   :  { %v97_v10 = vld [vmem:[#allocation2 + $0x8] sm:$0xff] }
  0x99   :  { %v128_v8 = vpop.f32.mrf.mxu0  ;;  %v172_v11 = vpop.f32.mrf.mxu1 }
  0x9a   :  { %v133_v9 = vadd.f32 %v128_v8, %v96_v7 }
  0x9c   :  { %136 = vst.msk [vmem:[#allocation2] sm:$0xff] %vm93_vm1, %v133_v9 }
  0xa1   :  { %v130_v12 = vpop.f32.mrf.mxu0  ;;  %v174_v17 = vpop.f32.mrf.mxu1 }
  0xa2   :  { %v134_v13 = vadd.f32 %v130_v12, %v97_v10 }
  0xa3   :  { %v141_v14 = vld [vmem:[#allocation2] sm:$0xff] }
  0xa4   :  { %v177_v15 = vadd.f32 %v172_v11, %v141_v14  ;;  %137 = vst.msk [vmem:[#allocation2 + $0x8] sm:$0xff] %vm93_vm1, %v134_v13 }
  0xa6   :  { %179 = vst.msk [vmem:[#allocation2] sm:$0xff] %vm93_vm1, %v177_v15 }
  0xab   :  { %v142_v16 = vld [vmem:[#allocation2 + $0x8] sm:$0xff] }
  0xac   :  { %v178_v18 = vadd.f32 %v174_v17, %v142_v16 }
  0xad   :  { %v181_v19 = vld [vmem:[#allocation2] sm:$0xff] }
  0xae   :  { %180 = vst.msk [vmem:[#allocation2 + $0x8] sm:$0xff] %vm93_vm1, %v178_v18 }
  0xaf   :  { %183 = vst.msk [vmem:[#allocation11] sm:$0xff] %vm93_vm1, %v181_v19 }
  0xb5   :  { %v182_v20 = vld [vmem:[#allocation2 + $0x8] sm:$0xff] }
  0xb6   :  { %184 = vst.msk [vmem:[#allocation11 + $0x8] sm:$0xff] %vm93_vm1, %v182_v20 }
  0xb7   :  { %197 = dma.vmem_to_hbm [thread:$0]  %s190_s13, 256, %s192_s16, [#allocation5], %s373_s17, %s373_s17, %s374_s18  }
  0xb8   :  { %364 = dma.done.wait [#allocation5], 256  }
  0xb9   :  { %365 = vsyncadd [#allocation5], 4294967040 }
  0xba   :  { %202 = vsyncpa [#allocation4], 1 }
  0xbb   :  { %203 = vsyncpa [#allocation7], 1 }
  0xbc   :  { %204 = vsyncpa [#allocation10], 1 }
  0xbd   :  { %205 = vsyncpa [#allocation5], 1 }

</bundles_post_ra>
